<compile_context>
chip_gen: v5e
topology: v5e:2x2
jax: 0.10.0
libtpu: 0.0.40
codegen_flags: <defaults>
</compile_context>

<pallas_src>
import jax
import jax.numpy as jnp
from jax import lax
from jax.experimental import pallas as pl
from jax.experimental.pallas import tpu as pltpu


def _make_kernel(n_layers, T, B, H):
    """Build the fused forward kernel for a fixed layer count / shapes."""

    def kernel(*refs):
        idx = 0
        xn_ref = refs[idx]; idx += 1          # (T*B, input_size_num)
        xs_ref = refs[idx]; idx += 1          # (T*B, input_size_state*emb_dim)
        wn, bn = [], []
        for _ in range(n_layers):
            wn.append(refs[idx]); bn.append(refs[idx + 1]); idx += 2
        ws, bs = [], []
        for _ in range(n_layers):
            ws.append(refs[idx]); bs.append(refs[idx + 1]); idx += 2
        wih_n_ref = refs[idx]                 # (F, 4H) rows of W_ih for num half
        wih_s_ref = refs[idx + 1]             # (F, 4H) rows of W_ih for state half
        whh_ref = refs[idx + 2]               # (H, 4H)
        blstm_ref = refs[idx + 3]             # (1, 4H)
        wout_ref = refs[idx + 4]              # (H, num_cls)
        bout_ref = refs[idx + 5]              # (1, num_cls)
        o_ref = refs[idx + 6]                 # (B, num_cls)

        # ---- numeric-feature MLP: Linear -> ReLU (dropout = identity) ----
        hn = xn_ref[...]
        for w, b in zip(wn, bn):
            hn = jnp.maximum(
                jnp.dot(hn, w[...], preferred_element_type=jnp.float32) + b[...],
                0.0)

        # ---- state-feature MLP (on flattened embedding): Linear -> ReLU ----
        hs = xs_ref[...]
        for w, b in zip(ws, bs):
            hs = jnp.maximum(
                jnp.dot(hs, w[...], preferred_element_type=jnp.float32) + b[...],
                0.0)

        # ---- hoisted input projection: all T*B rows at once, no concat ----
        # concat([hn, hs]) @ W_ih  ==  hn @ W_ih[:F] + hs @ W_ih[F:]
        pre_gates = (jnp.dot(hn, wih_n_ref[...], preferred_element_type=jnp.float32)
                     + jnp.dot(hs, wih_s_ref[...], preferred_element_type=jnp.float32)
                     + blstm_ref[...])                                 # (T*B, 4H)

        whh = whh_ref[...]

        # ---- LSTM recurrence over T steps, fully unrolled (T static) ----
        # PyTorch gate order: i, f, g, o.  Only h @ W_hh remains per step.
        h = jnp.zeros((B, H), jnp.float32)
        c = jnp.zeros((B, H), jnp.float32)
        for t in range(T):
            gates = (pre_gates[t * B:(t + 1) * B, :]
                     + jnp.dot(h, whh, preferred_element_type=jnp.float32))
            i = jax.nn.sigmoid(gates[:, 0:H])
            f = jax.nn.sigmoid(gates[:, H:2 * H])
            g = jnp.tanh(gates[:, 2 * H:3 * H])
            o = jax.nn.sigmoid(gates[:, 3 * H:4 * H])
            c = f * c + i * g
            h = o * jnp.tanh(c)

        # ---- output head on the last hidden state ----
        o_ref[...] = (jnp.dot(h, wout_ref[...],
                              preferred_element_type=jnp.float32)
                      + bout_ref[...])

    return kernel


def ts_learner_sp_forward(x_num, x_state, params, feature_size, hidden_size,
                          num_cls):
    """Wrapper: embedding lookup + layout glue + pallas_call."""
    B, T, _ = x_num.shape
    feat_last = feature_size[-1]

    # Embedding lookup (gather) + flatten, in plain JAX (glue).
    emb = jnp.take(params["embedding"], x_state, axis=0)       # (B,T,S,E)
    xs = emb.reshape(B, T, -1).astype(jnp.float32)

    # time-major, flattened to (T*B, F)
    xn_tm = jnp.transpose(x_num.astype(jnp.float32), (1, 0, 2)).reshape(T * B, -1)
    xs_tm = jnp.transpose(xs, (1, 0, 2)).reshape(T * B, -1)

    # Split W_ih into the rows that multiply the num-half / state-half of the
    # (would-be) concatenated feature vector, so the kernel never concatenates.
    w_ih_num = params["w_ih_t"][:feat_last, :]                  # (F, 4H)
    w_ih_state = params["w_ih_t"][feat_last:, :]                # (F, 4H)

    inputs = [xn_tm, xs_tm]
    for w, b in params["num_layers"]:
        inputs += [w, b.reshape(1, -1)]
    for w, b in params["state_layers"]:
        inputs += [w, b.reshape(1, -1)]
    inputs += [w_ih_num, w_ih_state, params["w_hh_t"],
               params["b_lstm"].reshape(1, -1),
               params["w_out_t"], params["b_out"].reshape(1, -1)]

    kernel = _make_kernel(len(feature_size), T, B, hidden_size)

    out = pl.pallas_call(
        kernel,
        out_shape=jax.ShapeDtypeStruct((B, num_cls), jnp.float32),
        in_specs=[pl.BlockSpec(memory_space=pltpu.MemorySpace.VMEM)] * len(inputs),
        out_specs=pl.BlockSpec(memory_space=pltpu.MemorySpace.VMEM),
    )(*inputs)
    return out


def init_params(key, input_size_num, input_size_state, feature_size,
                hidden_size, num_cls, embedding_word, embedding_dim):
    """Deterministic synthetic parameters (PyTorch-like uniform fan-in init).
    Linear / LSTM weights are stored pre-transposed as (in, out)."""
    keys = iter(jax.random.split(key, 64))

    def linear(fan_in, fan_out):
        bound = 1.0 / (fan_in ** 0.5)
        w = jax.random.uniform(next(keys), (fan_in, fan_out), jnp.float32,
                               -bound, bound)
        b = jax.random.uniform(next(keys), (fan_out,), jnp.float32,
                               -bound, bound)
        return w, b

    num_sizes = [input_size_num] + list(feature_size)
    state_sizes = [embedding_dim * input_size_state] + list(feature_size)
    num_layers = [linear(num_sizes[i], num_sizes[i + 1])
                  for i in range(len(feature_size))]
    state_layers = [linear(state_sizes[i], state_sizes[i + 1])
                    for i in range(len(feature_size))]

    embedding = jax.random.normal(next(keys), (embedding_word, embedding_dim),
                                  jnp.float32)

    lstm_in = num_sizes[-1] + state_sizes[-1]
    hb = 1.0 / (hidden_size ** 0.5)
    w_ih_t = jax.random.uniform(next(keys), (lstm_in, 4 * hidden_size),
                                jnp.float32, -hb, hb)
    w_hh_t = jax.random.uniform(next(keys), (hidden_size, 4 * hidden_size),
                                jnp.float32, -hb, hb)
    b_ih = jax.random.uniform(next(keys), (4 * hidden_size,), jnp.float32, -hb, hb)
    b_hh = jax.random.uniform(next(keys), (4 * hidden_size,), jnp.float32, -hb, hb)

    w_out_t, b_out = linear(hidden_size, num_cls)

    return dict(num_layers=num_layers, state_layers=state_layers,
                embedding=embedding, w_ih_t=w_ih_t, w_hh_t=w_hh_t,
                b_lstm=b_ih + b_hh, w_out_t=w_out_t, b_out=b_out)


def reference_forward(x_num, x_state, params, feature_size, hidden_size):
    """Pure-JAX reference (mirrors the PyTorch module in eval mode)."""
    B, T, _ = x_num.shape
    H = hidden_size
    h = x_num.astype(jnp.float32)
    for w, b in params["num_layers"]:
        h = jnp.maximum(h @ w + b, 0.0)
    s = jnp.take(params["embedding"], x_state, axis=0).reshape(B, T, -1)
    for w, b in params["state_layers"]:
        s = jnp.maximum(s @ w + b, 0.0)
    x = jnp.concatenate([h, s], axis=-1)

    def step(carry, xt):
        hh, cc = carry
        gates = xt @ params["w_ih_t"] + hh @ params["w_hh_t"] + params["b_lstm"]
        i = jax.nn.sigmoid(gates[:, :H])
        f = jax.nn.sigmoid(gates[:, H:2 * H])
        g = jnp.tanh(gates[:, 2 * H:3 * H])
        o = jax.nn.sigmoid(gates[:, 3 * H:])
        cc = f * cc + i * g
        hh = o * jnp.tanh(cc)
        return (hh, cc), None

    (hh, _), _ = lax.scan(step,
                          (jnp.zeros((B, H), jnp.float32),
                           jnp.zeros((B, H), jnp.float32)),
                          jnp.transpose(x, (1, 0, 2)))
    return hh @ params["w_out_t"] + params["b_out"]


if __name__ == "__main__":
    # Module hyper-parameters (small, consistent with ts_Learner_sp.__init__)
    input_size_num = 6
    input_size_state = 3
    feature_size = [16, 16]
    hidden_size = 32
    num_cls = 5
    embedding_word = 4
    embedding_dim = 4
    B, T = 2, 8

    params = init_params(jax.random.PRNGKey(0), input_size_num,
                         input_size_state, feature_size, hidden_size, num_cls,
                         embedding_word, embedding_dim)

    kx, ks = jax.random.split(jax.random.PRNGKey(0), 2)
    x_num = jax.random.normal(kx, (B, T, input_size_num), jnp.float32)
    x_state = jax.random.randint(ks, (B, T, input_size_state), 0,
                                 embedding_word)

    out = ts_learner_sp_forward(x_num, x_state, params, feature_size,
                                hidden_size, num_cls)
    out = jax.block_until_ready(out)

    ref = reference_forward(x_num, x_state, params, feature_size, hidden_size)
    assert out.shape == (B, num_cls), out.shape
    assert jnp.allclose(out, ref, atol=1e-4, rtol=1e-4), (out, ref)

    print("KERNEL_OK")
</pallas_src>

<mosaic_0001>
module attributes {stable_mosaic.version = 11 : i64} {
  func.func @kernel(%arg0: memref<16x6xf32, #tpu.memory_space<vmem>>, %arg1: memref<16x12xf32, #tpu.memory_space<vmem>>, %arg2: memref<6x16xf32, #tpu.memory_space<vmem>>, %arg3: memref<1x16xf32, #tpu.memory_space<vmem>>, %arg4: memref<16x16xf32, #tpu.memory_space<vmem>>, %arg5: memref<1x16xf32, #tpu.memory_space<vmem>>, %arg6: memref<12x16xf32, #tpu.memory_space<vmem>>, %arg7: memref<1x16xf32, #tpu.memory_space<vmem>>, %arg8: memref<16x16xf32, #tpu.memory_space<vmem>>, %arg9: memref<1x16xf32, #tpu.memory_space<vmem>>, %arg10: memref<16x128xf32, #tpu.memory_space<vmem>>, %arg11: memref<16x128xf32, #tpu.memory_space<vmem>>, %arg12: memref<32x128xf32, #tpu.memory_space<vmem>>, %arg13: memref<1x128xf32, #tpu.memory_space<vmem>>, %arg14: memref<32x5xf32, #tpu.memory_space<vmem>>, %arg15: memref<1x5xf32, #tpu.memory_space<vmem>>, %arg16: memref<2x5xf32, #tpu.memory_space<vmem>>) attributes {dimension_semantics = [], scalar_prefetch = 0 : i64, scratch_operands = 0 : i64, tpu.core_type = #tpu.core_type<tc>} {
    %c0 = arith.constant 0 : index
    %c0_0 = arith.constant 0 : index
    %0 = vector.load %arg0[%c0, %c0_0] : memref<16x6xf32, #tpu.memory_space<vmem>>, vector<16x6xf32>
    %c0_1 = arith.constant 0 : index
    %c0_2 = arith.constant 0 : index
    %1 = vector.load %arg2[%c0_1, %c0_2] : memref<6x16xf32, #tpu.memory_space<vmem>>, vector<6x16xf32>
    %cst = arith.constant dense<0.000000e+00> : vector<16x16xf32>
    %2 = tpu.matmul %0, %1, %cst {dimension_numbers = #tpu.dot_dimension_numbers<[1], [0], [0], [1], [0, 0, 1, 1], [], []>} : vector<16x6xf32>, vector<6x16xf32>, vector<16x16xf32> -> vector<16x16xf32>
    %c0_3 = arith.constant 0 : index
    %c0_4 = arith.constant 0 : index
    %3 = vector.load %arg3[%c0_3, %c0_4] : memref<1x16xf32, #tpu.memory_space<vmem>>, vector<1x16xf32>
    %4 = vector.broadcast %3 : vector<1x16xf32> to vector<16x16xf32>
    %5 = arith.addf %2, %4 : vector<16x16xf32>
    %cst_5 = arith.constant 0.000000e+00 : f32
    %6 = vector.broadcast %cst_5 : f32 to vector<16x16xf32>
    %7 = arith.maximumf %5, %6 : vector<16x16xf32>
    %c0_6 = arith.constant 0 : index
    %c0_7 = arith.constant 0 : index
    %8 = vector.load %arg4[%c0_6, %c0_7] : memref<16x16xf32, #tpu.memory_space<vmem>>, vector<16x16xf32>
    %cst_8 = arith.constant dense<0.000000e+00> : vector<16x16xf32>
    %9 = tpu.matmul %7, %8, %cst_8 {dimension_numbers = #tpu.dot_dimension_numbers<[1], [0], [0], [1], [0, 0, 1, 1], [], []>} : vector<16x16xf32>, vector<16x16xf32>, vector<16x16xf32> -> vector<16x16xf32>
    %c0_9 = arith.constant 0 : index
    %c0_10 = arith.constant 0 : index
    %10 = vector.load %arg5[%c0_9, %c0_10] : memref<1x16xf32, #tpu.memory_space<vmem>>, vector<1x16xf32>
    %11 = vector.broadcast %10 : vector<1x16xf32> to vector<16x16xf32>
    %12 = arith.addf %9, %11 : vector<16x16xf32>
    %cst_11 = arith.constant 0.000000e+00 : f32
    %13 = vector.broadcast %cst_11 : f32 to vector<16x16xf32>
    %14 = arith.maximumf %12, %13 : vector<16x16xf32>
    %c0_12 = arith.constant 0 : index
    %c0_13 = arith.constant 0 : index
    %15 = vector.load %arg1[%c0_12, %c0_13] : memref<16x12xf32, #tpu.memory_space<vmem>>, vector<16x12xf32>
    %c0_14 = arith.constant 0 : index
    %c0_15 = arith.constant 0 : index
    %16 = vector.load %arg6[%c0_14, %c0_15] : memref<12x16xf32, #tpu.memory_space<vmem>>, vector<12x16xf32>
    %cst_16 = arith.constant dense<0.000000e+00> : vector<16x16xf32>
    %17 = tpu.matmul %15, %16, %cst_16 {dimension_numbers = #tpu.dot_dimension_numbers<[1], [0], [0], [1], [0, 0, 1, 1], [], []>} : vector<16x12xf32>, vector<12x16xf32>, vector<16x16xf32> -> vector<16x16xf32>
    %c0_17 = arith.constant 0 : index
    %c0_18 = arith.constant 0 : index
    %18 = vector.load %arg7[%c0_17, %c0_18] : memref<1x16xf32, #tpu.memory_space<vmem>>, vector<1x16xf32>
    %19 = vector.broadcast %18 : vector<1x16xf32> to vector<16x16xf32>
    %20 = arith.addf %17, %19 : vector<16x16xf32>
    %cst_19 = arith.constant 0.000000e+00 : f32
    %21 = vector.broadcast %cst_19 : f32 to vector<16x16xf32>
    %22 = arith.maximumf %20, %21 : vector<16x16xf32>
    %c0_20 = arith.constant 0 : index
    %c0_21 = arith.constant 0 : index
    %23 = vector.load %arg8[%c0_20, %c0_21] : memref<16x16xf32, #tpu.memory_space<vmem>>, vector<16x16xf32>
    %cst_22 = arith.constant dense<0.000000e+00> : vector<16x16xf32>
    %24 = tpu.matmul %22, %23, %cst_22 {dimension_numbers = #tpu.dot_dimension_numbers<[1], [0], [0], [1], [0, 0, 1, 1], [], []>} : vector<16x16xf32>, vector<16x16xf32>, vector<16x16xf32> -> vector<16x16xf32>
    %c0_23 = arith.constant 0 : index
    %c0_24 = arith.constant 0 : index
    %25 = vector.load %arg9[%c0_23, %c0_24] : memref<1x16xf32, #tpu.memory_space<vmem>>, vector<1x16xf32>
    %26 = vector.broadcast %25 : vector<1x16xf32> to vector<16x16xf32>
    %27 = arith.addf %24, %26 : vector<16x16xf32>
    %cst_25 = arith.constant 0.000000e+00 : f32
    %28 = vector.broadcast %cst_25 : f32 to vector<16x16xf32>
    %29 = arith.maximumf %27, %28 : vector<16x16xf32>
    %c0_26 = arith.constant 0 : index
    %c0_27 = arith.constant 0 : index
    %30 = vector.load %arg10[%c0_26, %c0_27] : memref<16x128xf32, #tpu.memory_space<vmem>>, vector<16x128xf32>
    %cst_28 = arith.constant dense<0.000000e+00> : vector<16x128xf32>
    %31 = tpu.matmul %14, %30, %cst_28 {dimension_numbers = #tpu.dot_dimension_numbers<[1], [0], [0], [1], [0, 0, 1, 1], [], []>} : vector<16x16xf32>, vector<16x128xf32>, vector<16x128xf32> -> vector<16x128xf32>
    %c0_29 = arith.constant 0 : index
    %c0_30 = arith.constant 0 : index
    %32 = vector.load %arg11[%c0_29, %c0_30] : memref<16x128xf32, #tpu.memory_space<vmem>>, vector<16x128xf32>
    %cst_31 = arith.constant dense<0.000000e+00> : vector<16x128xf32>
    %33 = tpu.matmul %29, %32, %cst_31 {dimension_numbers = #tpu.dot_dimension_numbers<[1], [0], [0], [1], [0, 0, 1, 1], [], []>} : vector<16x16xf32>, vector<16x128xf32>, vector<16x128xf32> -> vector<16x128xf32>
    %34 = arith.addf %31, %33 : vector<16x128xf32>
    %c0_32 = arith.constant 0 : index
    %c0_33 = arith.constant 0 : index
    %35 = vector.load %arg13[%c0_32, %c0_33] : memref<1x128xf32, #tpu.memory_space<vmem>>, vector<1x128xf32>
    %36 = vector.broadcast %35 : vector<1x128xf32> to vector<16x128xf32>
    %37 = arith.addf %34, %36 : vector<16x128xf32>
    %c0_34 = arith.constant 0 : index
    %c0_35 = arith.constant 0 : index
    %38 = vector.load %arg12[%c0_34, %c0_35] : memref<32x128xf32, #tpu.memory_space<vmem>>, vector<32x128xf32>
    %cst_36 = arith.constant 0.000000e+00 : f32
    %39 = vector.broadcast %cst_36 : f32 to vector<2x32xf32>
    %cst_37 = arith.constant 0.000000e+00 : f32
    %40 = vector.broadcast %cst_37 : f32 to vector<2x32xf32>
    %41 = vector.extract_strided_slice %37 {offsets = [0, 0], sizes = [2, 128], strides = [1, 1]} : vector<16x128xf32> to vector<2x128xf32>
    %cst_38 = arith.constant dense<0.000000e+00> : vector<2x128xf32>
    %42 = tpu.matmul %39, %38, %cst_38 {dimension_numbers = #tpu.dot_dimension_numbers<[1], [0], [0], [1], [0, 0, 1, 1], [], []>} : vector<2x32xf32>, vector<32x128xf32>, vector<2x128xf32> -> vector<2x128xf32>
    %43 = arith.addf %41, %42 : vector<2x128xf32>
    %44 = vector.extract_strided_slice %43 {offsets = [0, 0], sizes = [2, 32], strides = [1, 1]} : vector<2x128xf32> to vector<2x32xf32>
    %45 = arith.negf %44 : vector<2x32xf32>
    %46 = math.exp %45 : vector<2x32xf32>
    %cst_39 = arith.constant 1.000000e+00 : f32
    %47 = vector.broadcast %cst_39 : f32 to vector<2x32xf32>
    %48 = arith.addf %47, %46 : vector<2x32xf32>
    %49 = arith.divf %47, %48 : vector<2x32xf32>
    %50 = vector.extract_strided_slice %43 {offsets = [0, 32], sizes = [2, 32], strides = [1, 1]} : vector<2x128xf32> to vector<2x32xf32>
    %51 = arith.negf %50 : vector<2x32xf32>
    %52 = math.exp %51 : vector<2x32xf32>
    %cst_40 = arith.constant 1.000000e+00 : f32
    %53 = vector.broadcast %cst_40 : f32 to vector<2x32xf32>
    %54 = arith.addf %53, %52 : vector<2x32xf32>
    %55 = arith.divf %53, %54 : vector<2x32xf32>
    %56 = vector.extract_strided_slice %43 {offsets = [0, 64], sizes = [2, 32], strides = [1, 1]} : vector<2x128xf32> to vector<2x32xf32>
    %57 = math.tanh %56 : vector<2x32xf32>
    %58 = vector.extract_strided_slice %43 {offsets = [0, 96], sizes = [2, 32], strides = [1, 1]} : vector<2x128xf32> to vector<2x32xf32>
    %59 = arith.negf %58 : vector<2x32xf32>
    %60 = math.exp %59 : vector<2x32xf32>
    %cst_41 = arith.constant 1.000000e+00 : f32
    %61 = vector.broadcast %cst_41 : f32 to vector<2x32xf32>
    %62 = arith.addf %61, %60 : vector<2x32xf32>
    %63 = arith.divf %61, %62 : vector<2x32xf32>
    %64 = arith.mulf %55, %40 : vector<2x32xf32>
    %65 = arith.mulf %49, %57 : vector<2x32xf32>
    %66 = arith.addf %64, %65 : vector<2x32xf32>
    %67 = math.tanh %66 : vector<2x32xf32>
    %68 = arith.mulf %63, %67 : vector<2x32xf32>
    %69 = vector.extract_strided_slice %37 {offsets = [2, 0], sizes = [2, 128], strides = [1, 1]} : vector<16x128xf32> to vector<2x128xf32>
    %cst_42 = arith.constant dense<0.000000e+00> : vector<2x128xf32>
    %70 = tpu.matmul %68, %38, %cst_42 {dimension_numbers = #tpu.dot_dimension_numbers<[1], [0], [0], [1], [0, 0, 1, 1], [], []>} : vector<2x32xf32>, vector<32x128xf32>, vector<2x128xf32> -> vector<2x128xf32>
    %71 = arith.addf %69, %70 : vector<2x128xf32>
    %72 = vector.extract_strided_slice %71 {offsets = [0, 0], sizes = [2, 32], strides = [1, 1]} : vector<2x128xf32> to vector<2x32xf32>
    %73 = arith.negf %72 : vector<2x32xf32>
    %74 = math.exp %73 : vector<2x32xf32>
    %cst_43 = arith.constant 1.000000e+00 : f32
    %75 = vector.broadcast %cst_43 : f32 to vector<2x32xf32>
    %76 = arith.addf %75, %74 : vector<2x32xf32>
    %77 = arith.divf %75, %76 : vector<2x32xf32>
    %78 = vector.extract_strided_slice %71 {offsets = [0, 32], sizes = [2, 32], strides = [1, 1]} : vector<2x128xf32> to vector<2x32xf32>
    %79 = arith.negf %78 : vector<2x32xf32>
    %80 = math.exp %79 : vector<2x32xf32>
    %cst_44 = arith.constant 1.000000e+00 : f32
    %81 = vector.broadcast %cst_44 : f32 to vector<2x32xf32>
    %82 = arith.addf %81, %80 : vector<2x32xf32>
    %83 = arith.divf %81, %82 : vector<2x32xf32>
    %84 = vector.extract_strided_slice %71 {offsets = [0, 64], sizes = [2, 32], strides = [1, 1]} : vector<2x128xf32> to vector<2x32xf32>
    %85 = math.tanh %84 : vector<2x32xf32>
    %86 = vector.extract_strided_slice %71 {offsets = [0, 96], sizes = [2, 32], strides = [1, 1]} : vector<2x128xf32> to vector<2x32xf32>
    %87 = arith.negf %86 : vector<2x32xf32>
    %88 = math.exp %87 : vector<2x32xf32>
    %cst_45 = arith.constant 1.000000e+00 : f32
    %89 = vector.broadcast %cst_45 : f32 to vector<2x32xf32>
    %90 = arith.addf %89, %88 : vector<2x32xf32>
    %91 = arith.divf %89, %90 : vector<2x32xf32>
    %92 = arith.mulf %83, %66 : vector<2x32xf32>
    %93 = arith.mulf %77, %85 : vector<2x32xf32>
    %94 = arith.addf %92, %93 : vector<2x32xf32>
    %95 = math.tanh %94 : vector<2x32xf32>
    %96 = arith.mulf %91, %95 : vector<2x32xf32>
    %97 = vector.extract_strided_slice %37 {offsets = [4, 0], sizes = [2, 128], strides = [1, 1]} : vector<16x128xf32> to vector<2x128xf32>
    %cst_46 = arith.constant dense<0.000000e+00> : vector<2x128xf32>
    %98 = tpu.matmul %96, %38, %cst_46 {dimension_numbers = #tpu.dot_dimension_numbers<[1], [0], [0], [1], [0, 0, 1, 1], [], []>} : vector<2x32xf32>, vector<32x128xf32>, vector<2x128xf32> -> vector<2x128xf32>
    %99 = arith.addf %97, %98 : vector<2x128xf32>
    %100 = vector.extract_strided_slice %99 {offsets = [0, 0], sizes = [2, 32], strides = [1, 1]} : vector<2x128xf32> to vector<2x32xf32>
    %101 = arith.negf %100 : vector<2x32xf32>
    %102 = math.exp %101 : vector<2x32xf32>
    %cst_47 = arith.constant 1.000000e+00 : f32
    %103 = vector.broadcast %cst_47 : f32 to vector<2x32xf32>
    %104 = arith.addf %103, %102 : vector<2x32xf32>
    %105 = arith.divf %103, %104 : vector<2x32xf32>
    %106 = vector.extract_strided_slice %99 {offsets = [0, 32], sizes = [2, 32], strides = [1, 1]} : vector<2x128xf32> to vector<2x32xf32>
    %107 = arith.negf %106 : vector<2x32xf32>
    %108 = math.exp %107 : vector<2x32xf32>
    %cst_48 = arith.constant 1.000000e+00 : f32
    %109 = vector.broadcast %cst_48 : f32 to vector<2x32xf32>
    %110 = arith.addf %109, %108 : vector<2x32xf32>
    %111 = arith.divf %109, %110 : vector<2x32xf32>
    %112 = vector.extract_strided_slice %99 {offsets = [0, 64], sizes = [2, 32], strides = [1, 1]} : vector<2x128xf32> to vector<2x32xf32>
    %113 = math.tanh %112 : vector<2x32xf32>
    %114 = vector.extract_strided_slice %99 {offsets = [0, 96], sizes = [2, 32], strides = [1, 1]} : vector<2x128xf32> to vector<2x32xf32>
    %115 = arith.negf %114 : vector<2x32xf32>
    %116 = math.exp %115 : vector<2x32xf32>
    %cst_49 = arith.constant 1.000000e+00 : f32
    %117 = vector.broadcast %cst_49 : f32 to vector<2x32xf32>
    %118 = arith.addf %117, %116 : vector<2x32xf32>
    %119 = arith.divf %117, %118 : vector<2x32xf32>
    %120 = arith.mulf %111, %94 : vector<2x32xf32>
    %121 = arith.mulf %105, %113 : vector<2x32xf32>
    %122 = arith.addf %120, %121 : vector<2x32xf32>
    %123 = math.tanh %122 : vector<2x32xf32>
    %124 = arith.mulf %119, %123 : vector<2x32xf32>
    %125 = vector.extract_strided_slice %37 {offsets = [6, 0], sizes = [2, 128], strides = [1, 1]} : vector<16x128xf32> to vector<2x128xf32>
    %cst_50 = arith.constant dense<0.000000e+00> : vector<2x128xf32>
    %126 = tpu.matmul %124, %38, %cst_50 {dimension_numbers = #tpu.dot_dimension_numbers<[1], [0], [0], [1], [0, 0, 1, 1], [], []>} : vector<2x32xf32>, vector<32x128xf32>, vector<2x128xf32> -> vector<2x128xf32>
    %127 = arith.addf %125, %126 : vector<2x128xf32>
    %128 = vector.extract_strided_slice %127 {offsets = [0, 0], sizes = [2, 32], strides = [1, 1]} : vector<2x128xf32> to vector<2x32xf32>
    %129 = arith.negf %128 : vector<2x32xf32>
    %130 = math.exp %129 : vector<2x32xf32>
    %cst_51 = arith.constant 1.000000e+00 : f32
    %131 = vector.broadcast %cst_51 : f32 to vector<2x32xf32>
    %132 = arith.addf %131, %130 : vector<2x32xf32>
    %133 = arith.divf %131, %132 : vector<2x32xf32>
    %134 = vector.extract_strided_slice %127 {offsets = [0, 32], sizes = [2, 32], strides = [1, 1]} : vector<2x128xf32> to vector<2x32xf32>
    %135 = arith.negf %134 : vector<2x32xf32>
    %136 = math.exp %135 : vector<2x32xf32>
    %cst_52 = arith.constant 1.000000e+00 : f32
    %137 = vector.broadcast %cst_52 : f32 to vector<2x32xf32>
    %138 = arith.addf %137, %136 : vector<2x32xf32>
    %139 = arith.divf %137, %138 : vector<2x32xf32>
    %140 = vector.extract_strided_slice %127 {offsets = [0, 64], sizes = [2, 32], strides = [1, 1]} : vector<2x128xf32> to vector<2x32xf32>
    %141 = math.tanh %140 : vector<2x32xf32>
    %142 = vector.extract_strided_slice %127 {offsets = [0, 96], sizes = [2, 32], strides = [1, 1]} : vector<2x128xf32> to vector<2x32xf32>
    %143 = arith.negf %142 : vector<2x32xf32>
    %144 = math.exp %143 : vector<2x32xf32>
    %cst_53 = arith.constant 1.000000e+00 : f32
    %145 = vector.broadcast %cst_53 : f32 to vector<2x32xf32>
    %146 = arith.addf %145, %144 : vector<2x32xf32>
    %147 = arith.divf %145, %146 : vector<2x32xf32>
    %148 = arith.mulf %139, %122 : vector<2x32xf32>
    %149 = arith.mulf %133, %141 : vector<2x32xf32>
    %150 = arith.addf %148, %149 : vector<2x32xf32>
    %151 = math.tanh %150 : vector<2x32xf32>
    %152 = arith.mulf %147, %151 : vector<2x32xf32>
    %153 = vector.extract_strided_slice %37 {offsets = [8, 0], sizes = [2, 128], strides = [1, 1]} : vector<16x128xf32> to vector<2x128xf32>
    %cst_54 = arith.constant dense<0.000000e+00> : vector<2x128xf32>
    %154 = tpu.matmul %152, %38, %cst_54 {dimension_numbers = #tpu.dot_dimension_numbers<[1], [0], [0], [1], [0, 0, 1, 1], [], []>} : vector<2x32xf32>, vector<32x128xf32>, vector<2x128xf32> -> vector<2x128xf32>
    %155 = arith.addf %153, %154 : vector<2x128xf32>
    %156 = vector.extract_strided_slice %155 {offsets = [0, 0], sizes = [2, 32], strides = [1, 1]} : vector<2x128xf32> to vector<2x32xf32>
    %157 = arith.negf %156 : vector<2x32xf32>
    %158 = math.exp %157 : vector<2x32xf32>
    %cst_55 = arith.constant 1.000000e+00 : f32
    %159 = vector.broadcast %cst_55 : f32 to vector<2x32xf32>
    %160 = arith.addf %159, %158 : vector<2x32xf32>
    %161 = arith.divf %159, %160 : vector<2x32xf32>
    %162 = vector.extract_strided_slice %155 {offsets = [0, 32], sizes = [2, 32], strides = [1, 1]} : vector<2x128xf32> to vector<2x32xf32>
    %163 = arith.negf %162 : vector<2x32xf32>
    %164 = math.exp %163 : vector<2x32xf32>
    %cst_56 = arith.constant 1.000000e+00 : f32
    %165 = vector.broadcast %cst_56 : f32 to vector<2x32xf32>
    %166 = arith.addf %165, %164 : vector<2x32xf32>
    %167 = arith.divf %165, %166 : vector<2x32xf32>
    %168 = vector.extract_strided_slice %155 {offsets = [0, 64], sizes = [2, 32], strides = [1, 1]} : vector<2x128xf32> to vector<2x32xf32>
    %169 = math.tanh %168 : vector<2x32xf32>
    %170 = vector.extract_strided_slice %155 {offsets = [0, 96], sizes = [2, 32], strides = [1, 1]} : vector<2x128xf32> to vector<2x32xf32>
    %171 = arith.negf %170 : vector<2x32xf32>
    %172 = math.exp %171 : vector<2x32xf32>
    %cst_57 = arith.constant 1.000000e+00 : f32
    %173 = vector.broadcast %cst_57 : f32 to vector<2x32xf32>
    %174 = arith.addf %173, %172 : vector<2x32xf32>
    %175 = arith.divf %173, %174 : vector<2x32xf32>
    %176 = arith.mulf %167, %150 : vector<2x32xf32>
    %177 = arith.mulf %161, %169 : vector<2x32xf32>
    %178 = arith.addf %176, %177 : vector<2x32xf32>
    %179 = math.tanh %178 : vector<2x32xf32>
    %180 = arith.mulf %175, %179 : vector<2x32xf32>
    %181 = vector.extract_strided_slice %37 {offsets = [10, 0], sizes = [2, 128], strides = [1, 1]} : vector<16x128xf32> to vector<2x128xf32>
    %cst_58 = arith.constant dense<0.000000e+00> : vector<2x128xf32>
    %182 = tpu.matmul %180, %38, %cst_58 {dimension_numbers = #tpu.dot_dimension_numbers<[1], [0], [0], [1], [0, 0, 1, 1], [], []>} : vector<2x32xf32>, vector<32x128xf32>, vector<2x128xf32> -> vector<2x128xf32>
    %183 = arith.addf %181, %182 : vector<2x128xf32>
    %184 = vector.extract_strided_slice %183 {offsets = [0, 0], sizes = [2, 32], strides = [1, 1]} : vector<2x128xf32> to vector<2x32xf32>
    %185 = arith.negf %184 : vector<2x32xf32>
    %186 = math.exp %185 : vector<2x32xf32>
    %cst_59 = arith.constant 1.000000e+00 : f32
    %187 = vector.broadcast %cst_59 : f32 to vector<2x32xf32>
    %188 = arith.addf %187, %186 : vector<2x32xf32>
    %189 = arith.divf %187, %188 : vector<2x32xf32>
    %190 = vector.extract_strided_slice %183 {offsets = [0, 32], sizes = [2, 32], strides = [1, 1]} : vector<2x128xf32> to vector<2x32xf32>
    %191 = arith.negf %190 : vector<2x32xf32>
    %192 = math.exp %191 : vector<2x32xf32>
    %cst_60 = arith.constant 1.000000e+00 : f32
    %193 = vector.broadcast %cst_60 : f32 to vector<2x32xf32>
    %194 = arith.addf %193, %192 : vector<2x32xf32>
    %195 = arith.divf %193, %194 : vector<2x32xf32>
    %196 = vector.extract_strided_slice %183 {offsets = [0, 64], sizes = [2, 32], strides = [1, 1]} : vector<2x128xf32> to vector<2x32xf32>
    %197 = math.tanh %196 : vector<2x32xf32>
    %198 = vector.extract_strided_slice %183 {offsets = [0, 96], sizes = [2, 32], strides = [1, 1]} : vector<2x128xf32> to vector<2x32xf32>
    %199 = arith.negf %198 : vector<2x32xf32>
    %200 = math.exp %199 : vector<2x32xf32>
    %cst_61 = arith.constant 1.000000e+00 : f32
    %201 = vector.broadcast %cst_61 : f32 to vector<2x32xf32>
    %202 = arith.addf %201, %200 : vector<2x32xf32>
    %203 = arith.divf %201, %202 : vector<2x32xf32>
    %204 = arith.mulf %195, %178 : vector<2x32xf32>
    %205 = arith.mulf %189, %197 : vector<2x32xf32>
    %206 = arith.addf %204, %205 : vector<2x32xf32>
    %207 = math.tanh %206 : vector<2x32xf32>
    %208 = arith.mulf %203, %207 : vector<2x32xf32>
    %209 = vector.extract_strided_slice %37 {offsets = [12, 0], sizes = [2, 128], strides = [1, 1]} : vector<16x128xf32> to vector<2x128xf32>
    %cst_62 = arith.constant dense<0.000000e+00> : vector<2x128xf32>
    %210 = tpu.matmul %208, %38, %cst_62 {dimension_numbers = #tpu.dot_dimension_numbers<[1], [0], [0], [1], [0, 0, 1, 1], [], []>} : vector<2x32xf32>, vector<32x128xf32>, vector<2x128xf32> -> vector<2x128xf32>
    %211 = arith.addf %209, %210 : vector<2x128xf32>
    %212 = vector.extract_strided_slice %211 {offsets = [0, 0], sizes = [2, 32], strides = [1, 1]} : vector<2x128xf32> to vector<2x32xf32>
    %213 = arith.negf %212 : vector<2x32xf32>
    %214 = math.exp %213 : vector<2x32xf32>
    %cst_63 = arith.constant 1.000000e+00 : f32
    %215 = vector.broadcast %cst_63 : f32 to vector<2x32xf32>
    %216 = arith.addf %215, %214 : vector<2x32xf32>
    %217 = arith.divf %215, %216 : vector<2x32xf32>
    %218 = vector.extract_strided_slice %211 {offsets = [0, 32], sizes = [2, 32], strides = [1, 1]} : vector<2x128xf32> to vector<2x32xf32>
    %219 = arith.negf %218 : vector<2x32xf32>
    %220 = math.exp %219 : vector<2x32xf32>
    %cst_64 = arith.constant 1.000000e+00 : f32
    %221 = vector.broadcast %cst_64 : f32 to vector<2x32xf32>
    %222 = arith.addf %221, %220 : vector<2x32xf32>
    %223 = arith.divf %221, %222 : vector<2x32xf32>
    %224 = vector.extract_strided_slice %211 {offsets = [0, 64], sizes = [2, 32], strides = [1, 1]} : vector<2x128xf32> to vector<2x32xf32>
    %225 = math.tanh %224 : vector<2x32xf32>
    %226 = vector.extract_strided_slice %211 {offsets = [0, 96], sizes = [2, 32], strides = [1, 1]} : vector<2x128xf32> to vector<2x32xf32>
    %227 = arith.negf %226 : vector<2x32xf32>
    %228 = math.exp %227 : vector<2x32xf32>
    %cst_65 = arith.constant 1.000000e+00 : f32
    %229 = vector.broadcast %cst_65 : f32 to vector<2x32xf32>
    %230 = arith.addf %229, %228 : vector<2x32xf32>
    %231 = arith.divf %229, %230 : vector<2x32xf32>
    %232 = arith.mulf %223, %206 : vector<2x32xf32>
    %233 = arith.mulf %217, %225 : vector<2x32xf32>
    %234 = arith.addf %232, %233 : vector<2x32xf32>
    %235 = math.tanh %234 : vector<2x32xf32>
    %236 = arith.mulf %231, %235 : vector<2x32xf32>
    %237 = vector.extract_strided_slice %37 {offsets = [14, 0], sizes = [2, 128], strides = [1, 1]} : vector<16x128xf32> to vector<2x128xf32>
    %cst_66 = arith.constant dense<0.000000e+00> : vector<2x128xf32>
    %238 = tpu.matmul %236, %38, %cst_66 {dimension_numbers = #tpu.dot_dimension_numbers<[1], [0], [0], [1], [0, 0, 1, 1], [], []>} : vector<2x32xf32>, vector<32x128xf32>, vector<2x128xf32> -> vector<2x128xf32>
    %239 = arith.addf %237, %238 : vector<2x128xf32>
    %240 = vector.extract_strided_slice %239 {offsets = [0, 0], sizes = [2, 32], strides = [1, 1]} : vector<2x128xf32> to vector<2x32xf32>
    %241 = arith.negf %240 : vector<2x32xf32>
    %242 = math.exp %241 : vector<2x32xf32>
    %cst_67 = arith.constant 1.000000e+00 : f32
    %243 = vector.broadcast %cst_67 : f32 to vector<2x32xf32>
    %244 = arith.addf %243, %242 : vector<2x32xf32>
    %245 = arith.divf %243, %244 : vector<2x32xf32>
    %246 = vector.extract_strided_slice %239 {offsets = [0, 32], sizes = [2, 32], strides = [1, 1]} : vector<2x128xf32> to vector<2x32xf32>
    %247 = arith.negf %246 : vector<2x32xf32>
    %248 = math.exp %247 : vector<2x32xf32>
    %cst_68 = arith.constant 1.000000e+00 : f32
    %249 = vector.broadcast %cst_68 : f32 to vector<2x32xf32>
    %250 = arith.addf %249, %248 : vector<2x32xf32>
    %251 = arith.divf %249, %250 : vector<2x32xf32>
    %252 = vector.extract_strided_slice %239 {offsets = [0, 64], sizes = [2, 32], strides = [1, 1]} : vector<2x128xf32> to vector<2x32xf32>
    %253 = math.tanh %252 : vector<2x32xf32>
    %254 = vector.extract_strided_slice %239 {offsets = [0, 96], sizes = [2, 32], strides = [1, 1]} : vector<2x128xf32> to vector<2x32xf32>
    %255 = arith.negf %254 : vector<2x32xf32>
    %256 = math.exp %255 : vector<2x32xf32>
    %cst_69 = arith.constant 1.000000e+00 : f32
    %257 = vector.broadcast %cst_69 : f32 to vector<2x32xf32>
    %258 = arith.addf %257, %256 : vector<2x32xf32>
    %259 = arith.divf %257, %258 : vector<2x32xf32>
    %260 = arith.mulf %251, %234 : vector<2x32xf32>
    %261 = arith.mulf %245, %253 : vector<2x32xf32>
    %262 = arith.addf %260, %261 : vector<2x32xf32>
    %263 = math.tanh %262 : vector<2x32xf32>
    %264 = arith.mulf %259, %263 : vector<2x32xf32>
    %c0_70 = arith.constant 0 : index
    %c0_71 = arith.constant 0 : index
    %265 = vector.load %arg14[%c0_70, %c0_71] : memref<32x5xf32, #tpu.memory_space<vmem>>, vector<32x5xf32>
    %cst_72 = arith.constant dense<0.000000e+00> : vector<2x5xf32>
    %266 = tpu.matmul %264, %265, %cst_72 {dimension_numbers = #tpu.dot_dimension_numbers<[1], [0], [0], [1], [0, 0, 1, 1], [], []>} : vector<2x32xf32>, vector<32x5xf32>, vector<2x5xf32> -> vector<2x5xf32>
    %c0_73 = arith.constant 0 : index
    %c0_74 = arith.constant 0 : index
    %267 = vector.load %arg15[%c0_73, %c0_74] : memref<1x5xf32, #tpu.memory_space<vmem>>, vector<1x5xf32>
    %268 = vector.broadcast %267 : vector<1x5xf32> to vector<2x5xf32>
    %269 = arith.addf %266, %268 : vector<2x5xf32>
    %c0_75 = arith.constant 0 : index
    %c0_76 = arith.constant 0 : index
    %270 = vector.load %arg16[%c0_75, %c0_76] : memref<2x5xf32, #tpu.memory_space<vmem>>, vector<2x5xf32>
    tpu.vector_store %arg16[%c0_75, %c0_76], %269 {strides = array<i32>} : memref<2x5xf32, #tpu.memory_space<vmem>>, vector<2x5xf32>,
    return
  }
}

</mosaic_0001>

<bundles_post_ra>
// kernel: tpu_custom_call.1
= control target key start
LH: loop header
LB: loop body
LE: loop exit
PB: predicated region body
PF: predicated region fallthrough
CT: control target
= control target key end

     0   :  { %s1671_s0 = inlined_call_operand.vmem [shape: f32[16,6], index: 0, kind: input, shape index: {}]   ;;  %s1672_s1 = inlined_call_operand.vmem [shape: f32[16,12], index: 1, kind: input, shape index: {}]   ;;  %s1673_s2 = inlined_call_operand.hbm [shape: f32[6,16], index: 2, kind: input, shape index: {}]   ;;  %s1674_s3 = inlined_call_operand.hbm [shape: f32[1,16], index: 3, kind: input, shape index: {}]   ;;  %s1675_s4 = inlined_call_operand.hbm [shape: f32[16,16], index: 4, kind: input, shape index: {}]   ;;  %s1676_s5 = inlined_call_operand.hbm [shape: f32[1,16], index: 5, kind: input, shape index: {}]   ;;  %s1677_s6 = inlined_call_operand.hbm [shape: f32[12,16], index: 6, kind: input, shape index: {}]   ;;  %s1678_s7 = inlined_call_operand.hbm [shape: f32[1,16], index: 7, kind: input, shape index: {}]   ;;  %s1679_s8 = inlined_call_operand.hbm [shape: f32[16,16], index: 8, kind: input, shape index: {}]   ;;  %s1680_s9 = inlined_call_operand.hbm [shape: f32[1,16], index: 9, kind: input, shape index: {}]   ;;  %s1681_s10 = inlined_call_operand.vmem [shape: f32[16,128], index: 10, kind: input, shape index: {}]   ;;  %s1682_s11 = inlined_call_operand.hbm [shape: f32[16,128], index: 11, kind: input, shape index: {}]   ;;  %s1683_s12 = inlined_call_operand.vmem [shape: f32[32,128], index: 12, kind: input, shape index: {}]   ;;  %s1684_s13 = inlined_call_operand.vmem [shape: f32[1,128], index: 13, kind: input, shape index: {}]   ;;  %s1685_s14 = inlined_call_operand.vmem [shape: f32[32,5], index: 14, kind: input, shape index: {}]   ;;  %s1686_s15 = inlined_call_operand.vmem [shape: f32[1,5], index: 15, kind: input, shape index: {}]   ;;  %s1687_s16 = inlined_call_operand.hbm [shape: f32[2,5], index: 16, kind: output, shape index: {}]  }
   0x1   :  { %1689 = sst [smem:[#allocation24_spill]] %s1671_s0 }
   0x2   :  { %21 = vsyncpa [#allocation3], 0 }
   0x3   :  { %22 = vsyncpa [#allocation6], 0 }
   0x4   :  { %23 = vsyncpa [#allocation9], 0 }
   0x5   :  { %24 = vsyncpa [#allocation12], 0 }
   0x6   :  { %25 = vsyncpa [#allocation15], 0  ;;  %s47_s23 = sshll.u32 %s1674_s3, 4  ;;  %s48_s23 = int_to_ptr.hbm [resolvable:$true] %s47_s23 }
   0x7   :  { %26 = vsyncpa [#allocation4], 0  ;;  %s1389_s24 = smov [#allocation5]   ;;  %s71_s28 = sshll.u32 %s1676_s5, 4  ;;  %s72_s28 = int_to_ptr.hbm [resolvable:$true] %s71_s28 }
   0x8   :  { %s49_s25 = sshll.u32 %s1389_s24, 4  ;;  %s1390_s29 = smov [#allocation8]   ;;  %s50_s25 = int_to_ptr.vmem [resolvable:$true] %s49_s25 }
   0x9   :  { %52 = dma.hbm_to_vmem [thread:$0]  %s48_s23, 16, %s50_s25, [#allocation6]  }
   0xa   :  { %s73_s30 = sshll.u32 %s1390_s29, 4  ;;  %s95_s18 = sshll.u32 %s1678_s7, 4  ;;  %s74_s30 = int_to_ptr.vmem [resolvable:$true] %s73_s30  ;;  %s96_s18 = int_to_ptr.hbm [resolvable:$true] %s95_s18 }
   0xb   :  { %76 = dma.hbm_to_vmem [thread:$0]  %s72_s28, 16, %s74_s30, [#allocation9]  }
   0xc   :  { %s119_s20 = sshll.u32 %s1680_s9, 4  ;;  %s1391_s21 = smov [#allocation11]   ;;  %s120_s20 = int_to_ptr.hbm [resolvable:$true] %s119_s20 }
   0xd   :  { %s97_s22 = sshll.u32 %s1391_s21, 4  ;;  %s1392_s5 = smov [#allocation14]   ;;  %s98_s22 = int_to_ptr.vmem [resolvable:$true] %s97_s22 }
   0xe   :  { %100 = dma.hbm_to_vmem [thread:$0]  %s96_s18, 16, %s98_s22, [#allocation12]  }
   0xf   :  { %s121_s23 = sshll.u32 %s1392_s5, 4  ;;  %s36_s26 = sshll.u32 %s1673_s2, 4  ;;  %s122_s23 = int_to_ptr.vmem [resolvable:$true] %s121_s23  ;;  %s37_s26 = int_to_ptr.hbm [resolvable:$true] %s36_s26 }
  0x10   :  { %124 = dma.hbm_to_vmem [thread:$0]  %s120_s20, 16, %s122_s23, [#allocation15]  }
  0x11   :  { %s57_s28 = sshll.u32 %s1675_s4, 4  ;;  %s1393_s29 = smov [#allocation2]   ;;  %s58_s28 = int_to_ptr.hbm [resolvable:$true] %s57_s28 }
  0x12   :  { %s38_s9 = sshll.u32 %s1393_s29, 4  ;;  %s1394_s30 = smov [#allocation7]   ;;  %s39_s9 = int_to_ptr.vmem [resolvable:$true] %s38_s9 }
  0x13   :  { %41 = dma.hbm_to_vmem [thread:$0]  %s37_s26, 128, %s39_s9, [#allocation3]  }
  0x14   :  { %s59_s0 = sshll.u32 %s1394_s30, 4  ;;  %s1395_s17 = smov 128   ;;  %s60_s0 = int_to_ptr.vmem [resolvable:$true] %s59_s0 }
  0x15   :  { %s1396_s18 = smov 8   ;;  %s81_s19 = sshll.u32 %s1677_s6, 4  ;;  %s82_s19 = int_to_ptr.hbm [resolvable:$true] %s81_s19 }
  0x16   :  { %65 = dma.hbm_to_vmem [thread:$0]  %s58_s28, 256, %s60_s0, [#allocation6], %s1395_s17, %s1395_s17, %s1396_s18  }
  0x17   :  { %s1397_s20 = smov [#allocation10]   ;;  %s105_s5 = sshll.u32 %s1679_s8, 4  ;;  %s106_s5 = int_to_ptr.hbm [resolvable:$true] %s105_s5 }
  0x18   :  { %s83_s21 = sshll.u32 %s1397_s20, 4  ;;  %s1398_s23 = smov [#allocation13]   ;;  %s84_s21 = int_to_ptr.vmem [resolvable:$true] %s83_s21 }
  0x19   :  { %89 = dma.hbm_to_vmem [thread:$0]  %s82_s19, 256, %s84_s21, [#allocation9], %s1395_s17, %s1395_s17, %s1396_s18  }
  0x1a   :  { %s107_s24 = sshll.u32 %s1398_s23, 4  ;;  %s131_s7 = sshll.u32 %s1682_s11, 4  ;;  %s108_s24 = int_to_ptr.vmem [resolvable:$true] %s107_s24  ;;  %s132_s7 = int_to_ptr.hbm [resolvable:$true] %s131_s7 }
  0x1b   :  { %113 = dma.hbm_to_vmem [thread:$0]  %s106_s5, 256, %s108_s24, [#allocation12], %s1395_s17, %s1395_s17, %s1396_s18  }
  0x1c   :  { %s1399_s6 = smov [#allocation16]  }
  0x1d   :  { %s133_s27 = sshll.u32 %s1399_s6, 4  ;;  %s134_s27 = int_to_ptr.vmem [resolvable:$true] %s133_s27 }
  0x1e   :  { %139 = dma.hbm_to_vmem [thread:$0]  %s132_s7, 256, %s134_s27, [#allocation15], %s1395_s17, %s1395_s17, %s1396_s18  }
  0x1f   :  { %1377 = dma.done.wait [#allocation3], 128  }
  0x20   :  { %1378 = vsyncadd [#allocation3], 4294967168 }
  0x21   :  { %1379 = dma.done.wait [#allocation6], 272  }
  0x22   :  { %1380 = vsyncadd [#allocation6], 4294967024 }
  0x23   :  { %1381 = dma.done.wait [#allocation9], 272  }
  0x24   :  { %1382 = vsyncadd [#allocation9], 4294967024 }
  0x25   :  { %1383 = dma.done.wait [#allocation12], 272  }
  0x26   :  { %1384 = vsyncadd [#allocation12], 4294967024 }
  0x27   :  { %1385 = dma.done.wait [#allocation15], 272  }
  0x28   :  { %1386 = vsyncadd [#allocation15], 4294967024  ;;  %vm280_vm0 = vcmask 1043456   ;;  %vm198_vm1 = vcmask 1045504   ;;  %v268_v0 = vld [vmem:[#allocation10 + $0x8] sm:$0xf] }
  0x29   :  { %v267_v1 = vld [vmem:[#allocation10] sm:$0xff]  ;;  %vm191_vm2 = vcmask 48128   ;;  %1027 = vmatpush.msk.msra.mxu2 %vm280_vm0, %v268_v0  ;;  %vm273_vm3 = vcmask 97280   ;;  %s1690_s9 = sld [smem:[#allocation24_spill]]  ;;  %v266_v5 = vld [vmem:[%s1672_s1 + $0x8] sm:$0xff]  ;;  %v228_v9 = vld [vmem:[#allocation7 + $0x8] sm:$0xff] }
  0x2a   :  { %v265_v2 = vld [vmem:[%s1672_s1] sm:$0xff]  ;;  %v310_v6 = vld [vmem:[#allocation13 + $0x8] sm:$0xff]  ;;  %v309_v8 = vld [vmem:[#allocation13] sm:$0xff]  ;;  %254 = vmatpush.msra.mxu1 %v228_v9  ;;  %vm233_vm4 = vcmask 130048   ;;  %v1400_v33 = vmov 0.0   ;;  %s1401_s26 = smov 64  }
  0x2b   :  { %v186_v3 = vld [vmem:[#allocation2] sm:$0x3f]  ;;  %299 = vmatpush.msra.mxu2 %v267_v1  ;;  %335 = vmatpush.msra.mxu3 %v310_v6  ;;  %v227_v10 = vld [vmem:[#allocation7] sm:$0xff]  ;;  %v1531_v11 = vld [vmem:[%s1683_s12 + $0x18] sm:$0xff]  ;;  %vm418_vm9 = vcmask 261120   ;;  %s1403_s17 = smov [#allocation17]  }
  0x2c   :  { %1022 = vmatpush.msk.msra.mxu0 %vm198_vm1, %v186_v3  ;;  %1028 = vmatmul.msk.f32.vlgmr.msra.gmra.mxu2 %vm273_vm3, %v265_v2  ;;  %v349_v12 = vld [vmem:[#allocation16 + $0x8] sm:$0xff]  ;;  %v1540_v14 = vld [vmem:[%s1683_s12 + $0x10] sm:$0xff]  ;;  %v348_v27 = vld [vmem:[#allocation16] sm:$0xff]  ;;  %s1006_s18 = sshll.u32 %s1403_s17, 4  ;;  %s1007_s18 = int_to_ptr.vmem [resolvable:$true] %s1006_s18 }
  0x2d   :  { %336 = vmatpush.msra.mxu3 %v309_v8  ;;  %255 = vmatpush.msra.mxu1 %v227_v10  ;;  %v347_v13 = vld [vmem:[%s1681_s10 + $0x8] sm:$0xff]  ;;  %v346_v28 = vld [vmem:[%s1681_s10] sm:$0xff]  ;;  %v1069_v34 = vld [vmem:[#allocation8] ss:$0 sm:$0xff] }
  0x2e   :  { %434 = vmatpush.msrb.mxu2 %v1531_v11  ;;  %370 = vmatpush.msrb.mxu0 %v349_v12  ;;  %v1068_v15 = vld [vmem:[#allocation5] ss:$0 sm:$0xff]  ;;  %v1067_v19 = vld [vmem:[#allocation11] ss:$0 sm:$0xff]  ;;  %v1561_v29 = vld [vmem:[%s1683_s12] sm:$0xff] }
  0x2f   :  { %v184_v4 = vld [vmem:[%s1690_s9] sm:$0xff]  ;;  %v185_v7 = vld [vmem:[%s1690_s9 + $0x8] sm:$0xff]  ;;  %399 = vmatpush.msrb.mxu1 %v347_v13  ;;  %497 = vmatpush.msrb.mxu3 %v1531_v11  ;;  %v1070_v38 = vld [vmem:[#allocation14] ss:$0 sm:$0xff] }
  0x30   :  { %1023 = vmatmul.msk.f32.vlgmr.msra.gmra.mxu0 %vm191_vm2, %v184_v4  ;;  %435 = vmatpush.msrb.mxu2 %v1540_v14  ;;  %v1551_v26 = vld [vmem:[%s1683_s12 + $0x8] sm:$0xff]  ;;  %v1593_v49 = vld [vmem:[%s1684_s13] ss:$0 sm:$0xff]  ;;  %s1402_s13 = smov 32  }
  0x31   :  { %498 = vmatpush.msrb.mxu3 %v1540_v14  ;;  %371 = vmatpush.msrb.mxu0 %v348_v27 }
  0x32   :  { %436 = vmatpush.msrb.mxu2 %v1551_v26  ;;  %400 = vmatpush.msrb.mxu1 %v346_v28 }
  0x33   :  { %499 = vmatpush.msrb.mxu3 %v1551_v26  ;;  %707 = vmatpush.msra.mxu0 %v1531_v11 }
  0x34   :  { %1029 = vmatmul.msk.f32.gmra.mxu2 %vm273_vm3, %v266_v5 }
  0x35   :  { %437 = vmatpush.msrb.mxu2 %v1561_v29  ;;  %500 = vmatpush.msrb.mxu3 %v1561_v29 }
  0x36   :  { %708 = vmatpush.msra.mxu0 %v1540_v14 }
  0x37   :  { %567 = vmatpush.msra.mxu2 %v1531_v11 }
  0x38   :  { %1024 = vmatmul.msk.f32.gmra.mxu0 %vm191_vm2, %v185_v7 }
  0x39   :  { %568 = vmatpush.msra.mxu2 %v1540_v14  ;;  %709 = vmatpush.msra.mxu0 %v1551_v26 }
  0x3b   :  { %569 = vmatpush.msra.mxu2 %v1551_v26  ;;  %710 = vmatpush.msra.mxu0 %v1561_v29 }
  0x3c   :  { %438 = vmatmul.f32.vlgmr.msrb.gmra.mxu2 %v1400_v33 }
  0x3d   :  { %570 = vmatpush.msra.mxu2 %v1561_v29 }
  0x3f   :  { %843 = vmatpush.msrb.mxu2 %v1531_v11 }
  0x41   :  { %844 = vmatpush.msrb.mxu2 %v1540_v14 }
  0x43   :  { %845 = vmatpush.msrb.mxu2 %v1551_v26 }
  0x45   :  { %846 = vmatpush.msrb.mxu2 %v1561_v29 }
  0xad   :  { %v219_v16 = vpop.f32.mrf.mxu0 }
  0xae   :  { %v220_v17 = vadd.f32 %v1068_v15, %v219_v16 }
  0xaf   :  { %v301_v20 = vpop.f32.mrf.mxu2 }
  0xb0   :  { %v225_v18 = vmax.f32 %v220_v17, 0.0  ;;  %v302_v21 = vadd.f32 %v1067_v19, %v301_v20 }
  0xb2   :  { %1025 = vmatmul.msk.f32.vlgmr.msra.gmra.mxu1 %vm233_vm4, %v225_v18  ;;  %v307_v22 = vmax.f32 %v302_v21, 0.0 }
  0xb3   :  { %773 = vmatpush.msra.mxu1 %v1531_v11 }
  0xb4   :  { %1030 = vmatmul.msk.f32.vlgmr.msra.gmra.mxu3 %vm233_vm4, %v307_v22 }
  0xb5   :  { %637 = vmatpush.msra.mxu3 %v1531_v11  ;;  %774 = vmatpush.msra.mxu1 %v1540_v14  ;;  %v222_v30 = vpop.f32.mrf.mxu0 }
  0xb6   :  { %v223_v31 = vadd.f32 %v1068_v15, %v222_v30 }
  0xb7   :  { %v304_v23 = vpop.f32.mrf.mxu2  ;;  %638 = vmatpush.msra.mxu3 %v1540_v14  ;;  %775 = vmatpush.msra.mxu1 %v1551_v26 }
  0xb8   :  { %v305_v24 = vadd.f32 %v1067_v19, %v304_v23  ;;  %v226_v32 = vmax.f32 %v223_v31, 0.0 }
  0xb9   :  { %639 = vmatpush.msra.mxu3 %v1551_v26  ;;  %776 = vmatpush.msra.mxu1 %v1561_v29 }
  0xba   :  { %v308_v25 = vmax.f32 %v305_v24, 0.0  ;;  %1026 = vmatmul.msk.f32.gmra.mxu1 %vm233_vm4, %v226_v32 }
  0xbb   :  { %640 = vmatpush.msra.mxu3 %v1561_v29 }
  0xbc   :  { %1031 = vmatmul.msk.f32.gmra.mxu3 %vm233_vm4, %v308_v25 }
  0xbf   :  { %v439_v52 = vpop.f32.mrf.mxu2 }
 0x12f   :  { %v257_v35 = vpop.f32.mrf.mxu1 }
 0x130   :  { %v258_v36 = vadd.f32 %v1069_v34, %v257_v35 }
 0x132   :  { %v263_v37 = vmax.f32 %v258_v36, 0.0 }
 0x134   :  { %1034 = vmatmul.msk.f32.vlgmr.msrb.gmra.mxu1 %vm233_vm4, %v263_v37 }
 0x137   :  { %v338_v39 = vpop.f32.mrf.mxu3  ;;  %v260_v45 = vpop.f32.mrf.mxu1 }
 0x138   :  { %v339_v40 = vadd.f32 %v1070_v38, %v338_v39  ;;  %v261_v46 = vadd.f32 %v1069_v34, %v260_v45 }
 0x13a   :  { %v344_v41 = vmax.f32 %v339_v40, 0.0  ;;  %v264_v47 = vmax.f32 %v261_v46, 0.0 }
 0x13c   :  { %1032 = vmatmul.msk.f32.vlgmr.msrb.gmra.mxu0 %vm233_vm4, %v344_v41  ;;  %1035 = vmatmul.msk.f32.gmra.mxu1 %vm233_vm4, %v264_v47 }
 0x13f   :  { %v341_v42 = vpop.f32.mrf.mxu3 }
 0x140   :  { %v342_v43 = vadd.f32 %v1070_v38, %v341_v42 }
 0x142   :  { %v345_v44 = vmax.f32 %v342_v43, 0.0 }
 0x144   :  { %1033 = vmatmul.msk.f32.gmra.mxu0 %vm233_vm4, %v345_v44 }
 0x1b1   :  { %v402_v48 = vpop.f32.mrf.mxu1 }
 0x1b9   :  { %v373_v50 = vpop.f32.mrf.mxu0 }
 0x1ba   :  { %v403_v51 = vadd.f32 %v402_v48, %v373_v50 }
 0x1bc   :  { %v1596_v53 = vadd.f32 %v1593_v49, %v403_v51 }
 0x1be   :  { %v442_v54 = vadd.f32 %v439_v52, %v1596_v53 }
 0x1c0   :  { %1073 = vtanh.f32 %v442_v54  ;;  %v1036_v56 = vmul.f32 -1.442695, %v442_v54 }
 0x1c2   :  { %1075 = vpow2.f32 %v1036_v56 }
 0x1c6   :  { %v1074_v55 = vpop.eup %1073 }
 0x1c7   :  { %465 = vrot.lane.b32.xlu0 %v1074_v55, %s1401_s26 }
 0x1c8   :  { %v1076_v57 = vpop.eup %1075 }
 0x1c9   :  { %v446_v58 = vadd.f32 1.0, %v1076_v57 }
 0x1cb   :  { %1077 = vrcp.f32 %v446_v58  ;;  %v458_v0 = vand.u32 2147483648, %v446_v58  ;;  %vm452_vm6 = vweird.f32 %v446_v58  ;;  %v456_v1 = vand.u32 2147483647, %v446_v58 }
 0x1cd   :  { %v459_v3 = vor.u32 1.1754944e-38, %v458_v0  ;;  %vm457_vm8 = vcmp.eq.f32.partialorder %v456_v1, 8.507059e+37 }
 0x1d1   :  { %v1078_v59 = vpop.eup %1077 }
 0x1d2   :  { %v448_v60 = vmul.f32 %v1078_v59, %v446_v58  ;;  %vm453_vm5 = vweird.f32 %v1078_v59 }
 0x1d3   :  { %vm454_vm7 = vmor %vm452_vm6, %vm453_vm5 }
 0x1d4   :  { %v449_v61 = vsub.f32 1.0, %v448_v60 }
 0x1d6   :  { %v450_v62 = vmul.f32 %v1078_v59, %v449_v61 }
 0x1d8   :  { %v451_v63 = vadd.f32 %v1078_v59, %v450_v62 }
 0x1da   :  { %v455_v2 = vsel %vm454_vm7, %v1078_v59, %v451_v63 }
 0x1db   :  { %v460_v5 = vsel %vm457_vm8, %v459_v3, %v455_v2 }
 0x1dc   :  { %v463_v7 = vmul.f32 0.0, %v460_v5 }
 0x239   :  { %v466_v4 = vpop.permute.xlu0 %465 }
 0x23a   :  { %v468_v6 = vmul.f32 %v466_v4, %v460_v5 }
 0x23c   :  { %470 = vrot.lane.b32.xlu0 %v468_v6, %s1402_s13 }
 0x2ae   :  { %v471_v8 = vpop.permute.xlu0 %470 }
 0x2af   :  { %v473_v9 = vadd.f32 %v471_v8, %v463_v7 }
 0x2b1   :  { %1079 = vtanh.f32 %v473_v9  ;;  %v530_v33 = vrot.slane %v473_v9, 6 }
 0x2b7   :  { %v1080_v10 = vpop.eup %1079 }
 0x2b8   :  { %476 = vrot.lane.b32.xlu1 %v1080_v10, %s1401_s26 }
 0x32a   :  { %v477_v12 = vpop.permute.xlu1 %476 }
 0x32b   :  { %v479_v13 = vmul.f32 %v477_v12, %v460_v5 }
 0x32d   :  { %481 = vrot.lane.b32.xlu1 %v479_v13, %s1402_s13 }
 0x39f   :  { %v482_v15 = vpop.permute.xlu1 %481 }
 0x3a0   :  { %1037 = vmatmul.msk.f32.vlgmr.msrb.gmra.mxu3 %vm418_vm9, %v482_v15 }
 0x3a1   :  { %913 = vmatpush.msrb.mxu3 %v1531_v11 }
 0x3a3   :  { %914 = vmatpush.msrb.mxu3 %v1540_v14 }
 0x3a5   :  { %915 = vmatpush.msrb.mxu3 %v1551_v26 }
 0x3a7   :  { %916 = vmatpush.msrb.mxu3 %v1561_v29 }
 0x423   :  { %v502_v16 = vpop.f32.mrf.mxu3 }
 0x424   :  { %v506_v17 = vrot.slane %v502_v16, 6 }
 0x426   :  { %v508_v18 = vadd.f32 %v506_v17, %v1596_v53 }
 0x428   :  { %1081 = vtanh.f32 %v508_v18  ;;  %v1038_v20 = vmul.f32 -1.442695, %v508_v18 }
 0x42a   :  { %1083 = vpow2.f32 %v1038_v20 }
 0x42e   :  { %v1082_v19 = vpop.eup %1081 }
 0x42f   :  { %534 = vrot.lane.b32.xlu2 %v1082_v19, %s1401_s26 }
 0x430   :  { %v1084_v21 = vpop.eup %1083 }
 0x431   :  { %v512_v22 = vadd.f32 1.0, %v1084_v21 }
 0x433   :  { %1085 = vrcp.f32 %v512_v22  ;;  %v524_v26 = vand.u32 2147483648, %v512_v22  ;;  %vm518_vm11 = vweird.f32 %v512_v22  ;;  %v522_v27 = vand.u32 2147483647, %v512_v22 }
 0x435   :  { %v525_v29 = vor.u32 1.1754944e-38, %v524_v26  ;;  %vm523_vm13 = vcmp.eq.f32.partialorder %v522_v27, 8.507059e+37 }
 0x439   :  { %v1086_v11 = vpop.eup %1085 }
 0x43a   :  { %v514_v23 = vmul.f32 %v1086_v11, %v512_v22  ;;  %vm519_vm10 = vweird.f32 %v1086_v11 }
 0x43b   :  { %vm520_vm12 = vmor %vm518_vm11, %vm519_vm10 }
 0x43c   :  { %v515_v14 = vsub.f32 1.0, %v514_v23 }
 0x43e   :  { %v516_v24 = vmul.f32 %v1086_v11, %v515_v14 }
 0x440   :  { %v517_v25 = vadd.f32 %v1086_v11, %v516_v24 }
 0x442   :  { %v521_v28 = vsel %vm520_vm12, %v1086_v11, %v517_v25 }
 0x443   :  { %v526_v31 = vsel %vm523_vm13, %v525_v29, %v521_v28 }
 0x444   :  { %v532_v34 = vmul.f32 %v530_v33, %v526_v31 }
 0x489   :  { %v535_v30 = vpop.permute.xlu2 %534 }
 0x48a   :  { %v537_v32 = vmul.f32 %v535_v30, %v526_v31 }
 0x48c   :  { %539 = vrot.lane.b32.xlu2 %v537_v32, %s1402_s13 }
 0x4e6   :  { %v540_v35 = vpop.permute.xlu2 %539 }
 0x4e7   :  { %v542_v36 = vadd.f32 %v540_v35, %v532_v34  ;;  %v376_v35 = vpop.f32.mrf.mxu0 }
 0x4e9   :  { %1087 = vtanh.f32 %v542_v36  ;;  %v600_v63 = vrot.slane %v542_v36, 6  ;;  %v405_v36 = vpop.f32.mrf.mxu1 }
 0x4ef   :  { %v1088_v37 = vpop.eup %1087 }
 0x4f0   :  { %545 = vrot.lane.b32.xlu0 %v1088_v37, %s1401_s26  ;;  %v406_v37 = vadd.f32 %v405_v36, %v376_v35 }
 0x562   :  { %v546_v38 = vpop.permute.xlu0 %545 }
 0x563   :  { %v548_v39 = vmul.f32 %v546_v38, %v526_v31  ;;  %v1627_v38 = vadd.f32 %v1593_v49, %v406_v37 }
 0x565   :  { %v550_v40 = vrot.slane %v548_v39, 2 }
 0x567   :  { %551 = vrot.lane.b32.xlu1 %v550_v40, %s1402_s13 }
 0x5d9   :  { %v552_v41 = vpop.permute.xlu1 %551 }
 0x5da   :  { %1039 = vmatmul.msk.f32.vlgmr.msra.gmra.mxu2 %vm418_vm9, %v552_v41 }
 0x65d   :  { %v572_v42 = vpop.f32.mrf.mxu2 }
 0x65e   :  { %v576_v43 = vrot.slane %v572_v42, 4 }
 0x660   :  { %v578_v44 = vadd.f32 %v576_v43, %v1596_v53 }
 0x662   :  { %1089 = vtanh.f32 %v578_v44  ;;  %v1040_v46 = vmul.f32 -1.442695, %v578_v44 }
 0x664   :  { %1091 = vpow2.f32 %v1040_v46 }
 0x668   :  { %v1090_v45 = vpop.eup %1089 }
 0x669   :  { %604 = vrot.lane.b32.xlu2 %v1090_v45, %s1401_s26 }
 0x66a   :  { %v1092_v47 = vpop.eup %1091 }
 0x66b   :  { %v582_v48 = vadd.f32 1.0, %v1092_v47 }
 0x66d   :  { %1093 = vrcp.f32 %v582_v48  ;;  %v594_v56 = vand.u32 2147483648, %v582_v48  ;;  %vm588_vm15 = vweird.f32 %v582_v48  ;;  %v592_v57 = vand.u32 2147483647, %v582_v48 }
 0x66f   :  { %v595_v59 = vor.u32 1.1754944e-38, %v594_v56  ;;  %vm593_vm1 = vcmp.eq.f32.partialorder %v592_v57, 8.507059e+37 }
 0x673   :  { %v1094_v50 = vpop.eup %1093 }
 0x674   :  { %v584_v51 = vmul.f32 %v1094_v50, %v582_v48  ;;  %vm589_vm14 = vweird.f32 %v1094_v50 }
 0x675   :  { %vm590_vm0 = vmor %vm588_vm15, %vm589_vm14 }
 0x676   :  { %v585_v52 = vsub.f32 1.0, %v584_v51 }
 0x678   :  { %v586_v54 = vmul.f32 %v1094_v50, %v585_v52 }
 0x67a   :  { %v587_v55 = vadd.f32 %v1094_v50, %v586_v54 }
 0x67c   :  { %v591_v58 = vsel %vm590_vm0, %v1094_v50, %v587_v55 }
 0x67d   :  { %v596_v61 = vsel %vm593_vm1, %v595_v59, %v591_v58 }
 0x67e   :  { %v602_v0 = vmul.f32 %v600_v63, %v596_v61 }
 0x6c3   :  { %v605_v60 = vpop.permute.xlu2 %604 }
 0x6c4   :  { %v607_v62 = vmul.f32 %v605_v60, %v596_v61 }
 0x6c6   :  { %609 = vrot.lane.b32.xlu0 %v607_v62, %s1402_s13 }
 0x738   :  { %v610_v1 = vpop.permute.xlu0 %609 }
 0x739   :  { %v612_v2 = vadd.f32 %v610_v1, %v602_v0 }
 0x73b   :  { %1095 = vtanh.f32 %v612_v2  ;;  %v670_v26 = vrot.slane %v612_v2, 6 }
 0x741   :  { %v1096_v3 = vpop.eup %1095 }
 0x742   :  { %615 = vrot.lane.b32.xlu1 %v1096_v3, %s1401_s26 }
 0x7b4   :  { %v616_v4 = vpop.permute.xlu1 %615 }
 0x7b5   :  { %v618_v5 = vmul.f32 %v616_v4, %v596_v61 }
 0x7b7   :  { %v620_v6 = vrot.slane %v618_v5, 4 }
 0x7b9   :  { %621 = vrot.lane.b32.xlu2 %v620_v6, %s1402_s13 }
 0x813   :  { %v622_v7 = vpop.permute.xlu2 %621 }
 0x814   :  { %1041 = vmatmul.msk.f32.vlgmr.msra.gmra.mxu3 %vm418_vm9, %v622_v7 }
 0x897   :  { %v642_v8 = vpop.f32.mrf.mxu3 }
 0x898   :  { %v646_v9 = vrot.slane %v642_v8, 2 }
 0x89a   :  { %v648_v10 = vadd.f32 %v646_v9, %v1596_v53 }
 0x89c   :  { %1097 = vtanh.f32 %v648_v10  ;;  %v1042_v13 = vmul.f32 -1.442695, %v648_v10 }
 0x89e   :  { %1099 = vpow2.f32 %v1042_v13 }
 0x8a2   :  { %v1098_v12 = vpop.eup %1097 }
 0x8a3   :  { %674 = vrot.lane.b32.xlu0 %v1098_v12, %s1401_s26 }
 0x8a4   :  { %v1100_v15 = vpop.eup %1099 }
 0x8a5   :  { %v652_v16 = vadd.f32 1.0, %v1100_v15 }
 0x8a7   :  { %1101 = vrcp.f32 %v652_v16  ;;  %v664_v22 = vand.u32 2147483648, %v652_v16  ;;  %vm658_vm3 = vweird.f32 %v652_v16  ;;  %v662_v11 = vand.u32 2147483647, %v652_v16 }
 0x8a9   :  { %v665_v23 = vor.u32 1.1754944e-38, %v664_v22  ;;  %vm663_vm5 = vcmp.eq.f32.partialorder %v662_v11, 8.507059e+37 }
 0x8ad   :  { %v1102_v17 = vpop.eup %1101 }
 0x8ae   :  { %v654_v18 = vmul.f32 %v1102_v17, %v652_v16  ;;  %vm659_vm2 = vweird.f32 %v1102_v17 }
 0x8af   :  { %vm660_vm4 = vmor %vm658_vm3, %vm659_vm2 }
 0x8b0   :  { %v655_v19 = vsub.f32 1.0, %v654_v18 }
 0x8b2   :  { %v656_v20 = vmul.f32 %v1102_v17, %v655_v19 }
 0x8b4   :  { %v657_v21 = vadd.f32 %v1102_v17, %v656_v20 }
 0x8b6   :  { %v661_v53 = vsel %vm660_vm4, %v1102_v17, %v657_v21 }
 0x8b7   :  { %v666_v24 = vsel %vm663_vm5, %v665_v23, %v661_v53 }
 0x8b8   :  { %v672_v27 = vmul.f32 %v670_v26, %v666_v24 }
 0x915   :  { %v675_v14 = vpop.permute.xlu0 %674 }
 0x916   :  { %v677_v25 = vmul.f32 %v675_v14, %v666_v24 }
 0x918   :  { %679 = vrot.lane.b32.xlu1 %v677_v25, %s1402_s13 }
 0x98a   :  { %v680_v28 = vpop.permute.xlu1 %679 }
 0x98b   :  { %v682_v29 = vadd.f32 %v680_v28, %v672_v27 }
 0x98d   :  { %1103 = vtanh.f32 %v682_v29  ;;  %v737_v58 = vrot.slane %v682_v29, 6 }
 0x993   :  { %v1104_v30 = vpop.eup %1103 }
 0x994   :  { %685 = vrot.lane.b32.xlu2 %v1104_v30, %s1401_s26 }
 0x9ee   :  { %v686_v31 = vpop.permute.xlu2 %685 }
 0x9ef   :  { %v688_v32 = vmul.f32 %v686_v31, %v666_v24 }
 0x9f1   :  { %v690_v33 = vrot.slane %v688_v32, 6 }
 0x9f3   :  { %691 = vrot.lane.b32.xlu0 %v690_v33, %s1402_s13 }
 0xa65   :  { %v692_v34 = vpop.permute.xlu0 %691 }
 0xa66   :  { %1043 = vmatmul.msk.f32.vlgmr.msra.gmra.mxu0 %vm418_vm9, %v692_v34 }
 0xae3   :  { %v712_v39 = vpop.f32.mrf.mxu0 }
 0xae4   :  { %v715_v40 = vadd.f32 %v712_v39, %v1627_v38 }
 0xae6   :  { %1105 = vtanh.f32 %v715_v40  ;;  %v1044_v42 = vmul.f32 -1.442695, %v715_v40 }
 0xae8   :  { %1107 = vpow2.f32 %v1044_v42 }
 0xaec   :  { %v1106_v41 = vpop.eup %1105 }
 0xaed   :  { %741 = vrot.lane.b32.xlu1 %v1106_v41, %s1401_s26 }
 0xaee   :  { %v1108_v43 = vpop.eup %1107 }
 0xaef   :  { %v719_v44 = vadd.f32 1.0, %v1108_v43 }
 0xaf1   :  { %1109 = vrcp.f32 %v719_v44  ;;  %v731_v49 = vand.u32 2147483648, %v719_v44  ;;  %vm725_vm7 = vweird.f32 %v719_v44  ;;  %v729_v51 = vand.u32 2147483647, %v719_v44 }
 0xaf3   :  { %v732_v54 = vor.u32 1.1754944e-38, %v731_v49  ;;  %vm730_vm10 = vcmp.eq.f32.partialorder %v729_v51, 8.507059e+37 }
 0xaf7   :  { %v1110_v45 = vpop.eup %1109 }
 0xaf8   :  { %v721_v46 = vmul.f32 %v1110_v45, %v719_v44  ;;  %vm726_vm6 = vweird.f32 %v1110_v45 }
 0xaf9   :  { %vm727_vm8 = vmor %vm725_vm7, %vm726_vm6  ;;  %vm999_vm7 = vcmask 33792  }
 0xafa   :  { %v722_v47 = vsub.f32 1.0, %v721_v46 }
 0xafc   :  { %v723_v48 = vmul.f32 %v1110_v45, %v722_v47 }
 0xafe   :  { %v724_v50 = vadd.f32 %v1110_v45, %v723_v48 }
 0xb00   :  { %v728_v52 = vsel %vm727_vm8, %v1110_v45, %v724_v50 }
 0xb01   :  { %v733_v56 = vsel %vm730_vm10, %v732_v54, %v728_v52 }
 0xb02   :  { %v739_v59 = vmul.f32 %v737_v58, %v733_v56 }
 0xb5f   :  { %v742_v55 = vpop.permute.xlu1 %741 }
 0xb60   :  { %v744_v57 = vmul.f32 %v742_v55, %v733_v56 }
 0xb62   :  { %746 = vrot.lane.b32.xlu2 %v744_v57, %s1402_s13 }
 0xbbc   :  { %v747_v60 = vpop.permute.xlu2 %746 }
 0xbbd   :  { %v749_v61 = vadd.f32 %v747_v60, %v739_v59 }
 0xbbf   :  { %1111 = vtanh.f32 %v749_v61  ;;  %v806_v11 = vrot.slane %v749_v61, 6 }
 0xbc5   :  { %v1112_v62 = vpop.eup %1111 }
 0xbc6   :  { %752 = vrot.lane.b32.xlu0 %v1112_v62, %s1401_s26 }
 0xc38   :  { %v753_v63 = vpop.permute.xlu0 %752 }
 0xc39   :  { %v755_v0 = vmul.f32 %v753_v63, %v733_v56 }
 0xc3b   :  { %757 = vrot.lane.b32.xlu1 %v755_v0, %s1402_s13 }
 0xcad   :  { %v758_v1 = vpop.permute.xlu1 %757 }
 0xcae   :  { %1045 = vmatmul.msk.f32.vlgmr.msra.gmra.mxu1 %vm418_vm9, %v758_v1 }
 0xd2b   :  { %v778_v2 = vpop.f32.mrf.mxu1 }
 0xd2c   :  { %v782_v3 = vrot.slane %v778_v2, 6 }
 0xd2e   :  { %v784_v4 = vadd.f32 %v782_v3, %v1627_v38 }
 0xd30   :  { %1113 = vtanh.f32 %v784_v4  ;;  %v1046_v6 = vmul.f32 -1.442695, %v784_v4 }
 0xd32   :  { %1115 = vpow2.f32 %v1046_v6 }
 0xd36   :  { %v1114_v5 = vpop.eup %1113 }
 0xd37   :  { %810 = vrot.lane.b32.xlu2 %v1114_v5, %s1401_s26 }
 0xd38   :  { %v1116_v7 = vpop.eup %1115 }
 0xd39   :  { %v788_v8 = vadd.f32 1.0, %v1116_v7 }
 0xd3b   :  { %1117 = vrcp.f32 %v788_v8  ;;  %v800_v16 = vand.u32 2147483648, %v788_v8  ;;  %vm794_vm12 = vweird.f32 %v788_v8  ;;  %v798_v17 = vand.u32 2147483647, %v788_v8 }
 0xd3d   :  { %v801_v19 = vor.u32 1.1754944e-38, %v800_v16  ;;  %vm799_vm14 = vcmp.eq.f32.partialorder %v798_v17, 8.507059e+37 }
 0xd41   :  { %v1118_v9 = vpop.eup %1117 }
 0xd42   :  { %v790_v10 = vmul.f32 %v1118_v9, %v788_v8  ;;  %vm795_vm11 = vweird.f32 %v1118_v9 }
 0xd43   :  { %vm796_vm13 = vmor %vm794_vm12, %vm795_vm11 }
 0xd44   :  { %v791_v12 = vsub.f32 1.0, %v790_v10 }
 0xd46   :  { %v792_v13 = vmul.f32 %v1118_v9, %v791_v12 }
 0xd48   :  { %v793_v15 = vadd.f32 %v1118_v9, %v792_v13 }
 0xd4a   :  { %v797_v18 = vsel %vm796_vm13, %v1118_v9, %v793_v15 }
 0xd4b   :  { %v802_v21 = vsel %vm799_vm14, %v801_v19, %v797_v18 }
 0xd4c   :  { %v808_v53 = vmul.f32 %v806_v11, %v802_v21  ;;  %v965_v11 = vld [vmem:[%s1685_s14] sm:$0xff] }
 0xd91   :  { %v811_v20 = vpop.permute.xlu2 %810 }
 0xd92   :  { %v813_v22 = vmul.f32 %v811_v20, %v802_v21  ;;  %v968_v20 = vld [vmem:[%s1685_s14 + $0x18] sm:$0xff] }
 0xd93   :  { %991 = vmatpush.msrb.mxu0 %v968_v20 }
 0xd94   :  { %815 = vrot.lane.b32.xlu0 %v813_v22, %s1402_s13  ;;  %v966_v22 = vld [vmem:[%s1685_s14 + $0x8] sm:$0xff] }
 0xe06   :  { %v816_v23 = vpop.permute.xlu0 %815 }
 0xe07   :  { %v818_v14 = vadd.f32 %v816_v23, %v808_v53 }
 0xe09   :  { %1119 = vtanh.f32 %v818_v14  ;;  %v876_v50 = vrot.slane %v818_v14, 6 }
 0xe0f   :  { %v1120_v24 = vpop.eup %1119 }
 0xe10   :  { %821 = vrot.lane.b32.xlu1 %v1120_v24, %s1401_s26 }
 0xe82   :  { %v822_v25 = vpop.permute.xlu1 %821 }
 0xe83   :  { %v824_v26 = vmul.f32 %v822_v25, %v802_v21  ;;  %v967_v21 = vld [vmem:[%s1685_s14 + $0x10] sm:$0xff]  ;;  %v1072_v25 = vld [vmem:[%s1686_s15] ss:$0 sm:$0xff]  ;;  %s1008_s14 = sshll.u32 %s1687_s16, 4  ;;  %s1009_s14 = int_to_ptr.hbm [resolvable:$true] %s1008_s14 }
 0xe84   :  { %992 = vmatpush.msrb.mxu0 %v967_v21 }
 0xe85   :  { %v826_v27 = vrot.slane %v824_v26, 2 }
 0xe86   :  { %993 = vmatpush.msrb.mxu0 %v966_v22 }
 0xe87   :  { %827 = vrot.lane.b32.xlu2 %v826_v27, %s1402_s13 }
 0xe88   :  { %994 = vmatpush.msrb.mxu0 %v965_v11 }
 0xee1   :  { %v828_v28 = vpop.permute.xlu2 %827 }
 0xee2   :  { %1047 = vmatmul.msk.f32.vlgmr.msrb.gmra.mxu2 %vm418_vm9, %v828_v28 }
 0xf65   :  { %v848_v29 = vpop.f32.mrf.mxu2 }
 0xf66   :  { %v852_v30 = vrot.slane %v848_v29, 4 }
 0xf68   :  { %v854_v31 = vadd.f32 %v852_v30, %v1627_v38 }
 0xf6a   :  { %1121 = vtanh.f32 %v854_v31  ;;  %v1048_v33 = vmul.f32 -1.442695, %v854_v31 }
 0xf6c   :  { %1123 = vpow2.f32 %v1048_v33 }
 0xf70   :  { %v1122_v32 = vpop.eup %1121 }
 0xf71   :  { %880 = vrot.lane.b32.xlu0 %v1122_v32, %s1401_s26 }
 0xf72   :  { %v1124_v34 = vpop.eup %1123 }
 0xf73   :  { %v858_v35 = vadd.f32 1.0, %v1124_v34 }
 0xf75   :  { %1125 = vrcp.f32 %v858_v35  ;;  %v870_v42 = vand.u32 2147483648, %v858_v35  ;;  %vm864_vm0 = vweird.f32 %v858_v35  ;;  %v868_v43 = vand.u32 2147483647, %v858_v35 }
 0xf77   :  { %v871_v45 = vor.u32 1.1754944e-38, %v870_v42  ;;  %vm869_vm2 = vcmp.eq.f32.partialorder %v868_v43, 8.507059e+37 }
 0xf7b   :  { %v1126_v36 = vpop.eup %1125 }
 0xf7c   :  { %v860_v37 = vmul.f32 %v1126_v36, %v858_v35  ;;  %vm865_vm15 = vweird.f32 %v1126_v36 }
 0xf7d   :  { %vm866_vm1 = vmor %vm864_vm0, %vm865_vm15 }
 0xf7e   :  { %v861_v39 = vsub.f32 1.0, %v860_v37 }
 0xf80   :  { %v862_v40 = vmul.f32 %v1126_v36, %v861_v39 }
 0xf82   :  { %v863_v41 = vadd.f32 %v1126_v36, %v862_v40 }
 0xf84   :  { %v867_v44 = vsel %vm866_vm1, %v1126_v36, %v863_v41 }
 0xf85   :  { %v872_v47 = vsel %vm869_vm2, %v871_v45, %v867_v44 }
 0xf86   :  { %v878_v49 = vmul.f32 %v876_v50, %v872_v47 }
 0xfe3   :  { %v881_v46 = vpop.permute.xlu0 %880 }
 0xfe4   :  { %v883_v48 = vmul.f32 %v881_v46, %v872_v47 }
 0xfe6   :  { %885 = vrot.lane.b32.xlu1 %v883_v48, %s1402_s13 }
0x1058   :  { %v886_v51 = vpop.permute.xlu1 %885 }
0x1059   :  { %v888_v52 = vadd.f32 %v886_v51, %v878_v49 }
0x105b   :  { %1127 = vtanh.f32 %v888_v52  ;;  %v946_v15 = vrot.slane %v888_v52, 6 }
0x1061   :  { %v1128_v54 = vpop.eup %1127 }
0x1062   :  { %891 = vrot.lane.b32.xlu2 %v1128_v54, %s1401_s26 }
0x10bc   :  { %v892_v55 = vpop.permute.xlu2 %891 }
0x10bd   :  { %v894_v56 = vmul.f32 %v892_v55, %v872_v47 }
0x10bf   :  { %v896_v57 = vrot.slane %v894_v56, 4 }
0x10c1   :  { %897 = vrot.lane.b32.xlu0 %v896_v57, %s1402_s13 }
0x1133   :  { %v898_v58 = vpop.permute.xlu0 %897 }
0x1134   :  { %1049 = vmatmul.msk.f32.vlgmr.msrb.gmra.mxu3 %vm418_vm9, %v898_v58 }
0x11b7   :  { %v918_v59 = vpop.f32.mrf.mxu3 }
0x11b8   :  { %v922_v60 = vrot.slane %v918_v59, 2 }
0x11ba   :  { %v924_v61 = vadd.f32 %v922_v60, %v1627_v38 }
0x11bc   :  { %1129 = vtanh.f32 %v924_v61  ;;  %v1050_v63 = vmul.f32 -1.442695, %v924_v61 }
0x11be   :  { %1131 = vpow2.f32 %v1050_v63 }
0x11c2   :  { %v1130_v62 = vpop.eup %1129 }
0x11c3   :  { %950 = vrot.lane.b32.xlu1 %v1130_v62, %s1401_s26 }
0x11c4   :  { %v1132_v0 = vpop.eup %1131 }
0x11c5   :  { %v928_v1 = vadd.f32 1.0, %v1132_v0 }
0x11c7   :  { %1133 = vrcp.f32 %v928_v1  ;;  %v940_v7 = vand.u32 2147483648, %v928_v1  ;;  %vm934_vm4 = vweird.f32 %v928_v1  ;;  %v938_v8 = vand.u32 2147483647, %v928_v1 }
0x11c9   :  { %v941_v9 = vor.u32 1.1754944e-38, %v940_v7  ;;  %vm939_vm6 = vcmp.eq.f32.partialorder %v938_v8, 8.507059e+37 }
0x11cd   :  { %v1134_v2 = vpop.eup %1133 }
0x11ce   :  { %v930_v3 = vmul.f32 %v1134_v2, %v928_v1  ;;  %vm935_vm3 = vweird.f32 %v1134_v2 }
0x11cf   :  { %vm936_vm5 = vmor %vm934_vm4, %vm935_vm3 }
0x11d0   :  { %v931_v4 = vsub.f32 1.0, %v930_v3 }
0x11d2   :  { %v932_v5 = vmul.f32 %v1134_v2, %v931_v4 }
0x11d4   :  { %v933_v6 = vadd.f32 %v1134_v2, %v932_v5 }
0x11d6   :  { %v937_v38 = vsel %vm936_vm5, %v1134_v2, %v933_v6 }
0x11d7   :  { %v942_v12 = vsel %vm939_vm6, %v941_v9, %v937_v38 }
0x11d8   :  { %v948_v16 = vmul.f32 %v946_v15, %v942_v12 }
0x1235   :  { %v951_v10 = vpop.permute.xlu1 %950 }
0x1236   :  { %v953_v13 = vmul.f32 %v951_v10, %v942_v12 }
0x1238   :  { %955 = vrot.lane.b32.xlu2 %v953_v13, %s1402_s13 }
0x1292   :  { %v956_v17 = vpop.permute.xlu2 %955 }
0x1293   :  { %v958_v18 = vadd.f32 %v956_v17, %v948_v16 }
0x1295   :  { %1135 = vtanh.f32 %v958_v18 }
0x129b   :  { %v1136_v19 = vpop.eup %1135 }
0x129c   :  { %961 = vrot.lane.b32.xlu0 %v1136_v19, %s1401_s26 }
0x130e   :  { %v962_v53 = vpop.permute.xlu0 %961 }
0x130f   :  { %v964_v23 = vmul.f32 %v962_v53, %v942_v12 }
0x1311   :  { %v974_v14 = vrot.slane %v964_v23, 6 }
0x1313   :  { %975 = vrot.lane.b32.xlu1 %v974_v14, %s1402_s13 }
0x1385   :  { %v976_v24 = vpop.permute.xlu1 %975 }
0x1386   :  { %1051 = vmatmul.msk.f32.vlgmr.msrb.gmra.mxu0 %vm418_vm9, %v976_v24 }
0x1403   :  { %v996_v26 = vpop.f32.mrf.mxu0 }
0x1404   :  { %v997_v27 = vadd.f32 %v1072_v25, %v996_v26 }
0x1406   :  { %1000 = vst.msk [vmem:[#allocation17] sm:$0x3] %vm999_vm7, %v997_v27 }
0x1407   :  { %1011 = dma.vmem_to_hbm [thread:$0]  %s1007_s18, 32, %s1009_s14, [#allocation4]  }
0x1408   :  { %1387 = dma.done.wait [#allocation4], 32  }
0x1409   :  { %1388 = vsyncadd [#allocation4], 4294967264 }
0x140a   :  { %1016 = vsyncpa [#allocation3], 1 }
0x140b   :  { %1017 = vsyncpa [#allocation6], 1 }
0x140c   :  { %1018 = vsyncpa [#allocation9], 1 }
0x140d   :  { %1019 = vsyncpa [#allocation12], 1 }
0x140e   :  { %1020 = vsyncpa [#allocation15], 1 }
0x140f   :  { %1021 = vsyncpa [#allocation4], 1 }

</bundles_post_ra>
